<compile_context>
chip_gen: v5e
topology: v5e:2x2
jax: 0.10.0
libtpu: 0.0.40
codegen_flags: <defaults>
</compile_context>

<pallas_src>
import functools

import jax
import jax.numpy as jnp
from jax import lax
from jax.experimental import pallas as pl
from jax.experimental.pallas import tpu as pltpu


def _seghead_kernel(x_ref, s1_ref, b1_ref, w1_ref, b2_ref, w2_ref, bias2_ref,
                    masks_ref, o_ref, *, W):
    """One batch element per grid step. Channels on sublanes, H*W on lanes."""
    _, Cin, HW = x_ref.shape
    Cmid = w1_ref.shape[1]

    # ---- bn1 + relu (folded per-channel scale/bias) ----
    x = x_ref[0]                                            # (Cin, HW)
    a = jnp.maximum(x * s1_ref[...] + b1_ref[...], 0.0)

    masks = masks_ref[...]                                  # (9, HW) border-validity masks
    w1 = w1_ref[...]                                        # (9, Cmid, Cin), bn2 scale folded in

    # ---- conv1: 3x3, pad=1, as 9 (shift, mask, matmul) taps, register acc ----
    acc = jnp.zeros((Cmid, HW), dtype=jnp.float32)
    for tap in range(9):
        dy, dx = tap // 3 - 1, tap % 3 - 1
        off = dy * W + dx                                   # flattened spatial shift
        if off == 0:
            a_tap = a
        else:
            s = off % HW
            # a_tap[:, p] = a[:, (p + off) % HW]; wrapped / out-of-image taps
            # are zeroed by the per-tap mask (matches zero padding).
            a_tap = jnp.concatenate([a[:, s:], a[:, :s]], axis=-1)
            a_tap = a_tap * masks[tap:tap + 1, :]
        acc = acc + jnp.dot(w1[tap], a_tap,
                            preferred_element_type=jnp.float32)

    # ---- bn2 bias (scale already folded into w1) + relu ----
    h = jnp.maximum(acc + b2_ref[...], 0.0)                 # (Cmid, HW)

    # ---- conv2: 1x1 with bias == single matmul + bias ----
    out = jnp.dot(w2_ref[...], h, preferred_element_type=jnp.float32)
    out = out + bias2_ref[...]
    o_ref[0] = out.astype(o_ref.dtype)                      # (Cout, HW), lane-dense store


def segmenthead_pallas(x_nchw, params, scale_factor=None):
    """x_nchw: (N, Cin, H, W) float32. Returns (N, Cout, H, W) (or upsampled)."""
    s1, b1, w1, s2, b2, w2, bias2 = params
    N, Cin, H, W = x_nchw.shape
    Cmid = w1.shape[-1]
    Cout = w2.shape[-1]
    HW = H * W

    # NCHW kept as-is; only a free contiguous reshape (no HBM transpose).
    x = x_nchw.reshape(N, Cin, HW).astype(jnp.float32)

    # Fold bn2 scale into conv1 weights and pre-transpose weights to (out, in)
    # so the kernel's matmuls are (out_ch, in_ch) x (in_ch, HW).
    w1f = jnp.transpose(w1 * s2[None, None, :], (0, 2, 1))  # (9, Cmid, Cin)
    w2t = jnp.transpose(w2, (1, 0))                         # (Cout, Cmid)

    s1c = s1.reshape(Cin, 1)
    b1c = b1.reshape(Cin, 1)
    b2c = b2.reshape(Cmid, 1)
    bias2c = bias2.reshape(Cout, 1)

    # Per-tap validity masks for zero padding of the 3x3 conv (flattened spatial).
    hh = jnp.arange(HW, dtype=jnp.int32) // W
    ww = jnp.arange(HW, dtype=jnp.int32) % W
    mlist = []
    for tap in range(9):
        dy, dx = tap // 3 - 1, tap % 3 - 1
        valid = (hh + dy >= 0) & (hh + dy < H) & (ww + dx >= 0) & (ww + dx < W)
        mlist.append(valid.astype(jnp.float32))
    masks = jnp.stack(mlist, axis=0)                        # (9, HW)

    full = lambda arr: pl.BlockSpec(arr.shape, lambda n: (0,) * arr.ndim)

    kernel = functools.partial(_seghead_kernel, W=W)

    # NOTE: at realistic H*W one would add a spatial grid axis (row tiles with a
    # 1-row halo) to stay inside v7x's smaller VMEM; whole-image blocks are fine
    # at these shapes.
    out_flat = pl.pallas_call(
        kernel,
        out_shape=jax.ShapeDtypeStruct((N, Cout, HW), jnp.float32),
        grid_spec=pltpu.PrefetchScalarGridSpec(
            num_scalar_prefetch=0,
            grid=(N,),
            in_specs=[
                pl.BlockSpec((1, Cin, HW), lambda n: (n, 0, 0)),
                full(s1c), full(b1c), full(w1f), full(b2c),
                full(w2t), full(bias2c), full(masks),
            ],
            out_specs=pl.BlockSpec((1, Cout, HW), lambda n: (n, 0, 0)),
        ),
        compiler_params=pltpu.CompilerParams(
            dimension_semantics=("parallel",)),
    )(x, s1c, b1c, w1f, b2c, w2t, bias2c, masks)

    out = out_flat.reshape(N, Cout, H, W)

    if scale_factor is not None:
        # TODO(synk): bilinear upsample (align_corners=False) done with
        # jax.image.resize in plain JAX; not part of the Pallas hot path.
        out = jax.image.resize(out, (N, Cout, H * scale_factor, W * scale_factor),
                               method="bilinear")
    return out


# ------------------------- pure-JAX reference -------------------------
def segmenthead_ref(x_nchw, params, scale_factor=None):
    s1, b1, w1, s2, b2, w2, bias2 = params
    N, Cin, H, W = x_nchw.shape
    Cmid, Cout = w1.shape[-1], w2.shape[-1]
    x = jnp.transpose(x_nchw, (0, 2, 3, 1))
    a = jnp.maximum(x * s1 + b1, 0.0)
    w1_hwio = w1.reshape(3, 3, Cin, Cmid)
    y = lax.conv_general_dilated(
        a, w1_hwio, window_strides=(1, 1), padding=((1, 1), (1, 1)),
        dimension_numbers=("NHWC", "HWIO", "NHWC"))
    h = jnp.maximum(y * s2 + b2, 0.0)
    out = jnp.einsum("nhwc,co->nhwo", h, w2) + bias2
    out = jnp.transpose(out, (0, 3, 1, 2))
    if scale_factor is not None:
        out = jax.image.resize(out, (N, Cout, H * scale_factor, W * scale_factor),
                               method="bilinear")
    return out


def make_params(key, inplanes, interplanes, outplanes):
    k = jax.random.split(key, 6)
    eps = 1e-5
    # BatchNorm fresh init: running_mean=0, running_var=1.  General fold would
    # be s = gamma/sqrt(var+eps), b = beta - mean*s; with fresh stats that is
    # s = gamma/sqrt(1+eps), b = beta.  Random gamma/beta keep the test non-trivial.
    mean1, var1 = 0.0, 1.0
    g1 = jax.random.normal(k[0], (inplanes,), jnp.float32) * 0.1 + 1.0
    beta1 = jax.random.normal(k[1], (inplanes,), jnp.float32) * 0.1
    s1 = g1 / jnp.sqrt(var1 + eps)
    b1 = beta1 - mean1 * s1
    # conv1: kaiming-normal fan_in, 3x3, no bias -> stored as (9, Cin, Cmid)
    fan_in1 = inplanes * 9
    w1 = jax.random.normal(k[2], (9, inplanes, interplanes), jnp.float32) * \
        jnp.sqrt(2.0 / fan_in1)
    mean2, var2 = 0.0, 1.0
    g2 = jax.random.normal(k[3], (interplanes,), jnp.float32) * 0.1 + 1.0
    beta2 = jax.random.normal(k[4], (interplanes,), jnp.float32) * 0.1
    s2 = g2 / jnp.sqrt(var2 + eps)
    b2 = beta2 - mean2 * s2
    # conv2: 1x1 with bias (bias init 0 per weight_init, kaiming weight)
    w2 = jax.random.normal(k[5], (interplanes, outplanes), jnp.float32) * \
        jnp.sqrt(2.0 / interplanes)
    bias2 = jnp.zeros((outplanes,), jnp.float32)
    return (s1, b1, w1, s2, b2, w2, bias2)


if __name__ == "__main__":
    key = jax.random.PRNGKey(0)
    kx, kp = jax.random.split(key)

    N, Cin, H, W = 2, 4, 16, 16
    Cmid, Cout = 8, 3

    x = jax.random.normal(kx, (N, Cin, H, W), jnp.float32)
    params = make_params(kp, Cin, Cmid, Cout)

    out = segmenthead_pallas(x, params, scale_factor=None)
    out = jax.block_until_ready(out)

    ref = segmenthead_ref(x, params, scale_factor=None)
    assert out.shape == (N, Cout, H, W)
    assert jnp.allclose(out, ref, atol=1e-4, rtol=1e-4), \
        f"max err {jnp.max(jnp.abs(out - ref))}"

    print("KERNEL_OK")
</pallas_src>

<mosaic_0001>
module attributes {stable_mosaic.version = 11 : i64} {
  func.func @_seghead_kernel(%arg0: i32, %arg1: memref<1x4x256xf32, #tpu.memory_space<vmem>>, %arg2: memref<4x1xf32, #tpu.memory_space<vmem>>, %arg3: memref<4x1xf32, #tpu.memory_space<vmem>>, %arg4: memref<9x8x4xf32, #tpu.memory_space<vmem>>, %arg5: memref<8x1xf32, #tpu.memory_space<vmem>>, %arg6: memref<3x8xf32, #tpu.memory_space<vmem>>, %arg7: memref<3x1xf32, #tpu.memory_space<vmem>>, %arg8: memref<9x256xf32, #tpu.memory_space<vmem>>, %arg9: memref<1x3x256xf32, #tpu.memory_space<vmem>>) attributes {dimension_semantics = [#tpu.dimension_semantics<parallel>], iteration_bounds = array<i64: 2>, scalar_prefetch = 0 : i64, scratch_operands = 0 : i64, tpu.core_type = #tpu.core_type<tc>, window_params = [{transform_indices = @transform_0, window_bounds = array<i64: 1, 4, 256>}, {pipeline_mode = #tpu.pipeline_mode<synchronous>, transform_indices = @transform_1, window_bounds = array<i64: 4, 1>}, {pipeline_mode = #tpu.pipeline_mode<synchronous>, transform_indices = @transform_2, window_bounds = array<i64: 4, 1>}, {pipeline_mode = #tpu.pipeline_mode<synchronous>, transform_indices = @transform_3, window_bounds = array<i64: 9, 8, 4>}, {pipeline_mode = #tpu.pipeline_mode<synchronous>, transform_indices = @transform_4, window_bounds = array<i64: 8, 1>}, {pipeline_mode = #tpu.pipeline_mode<synchronous>, transform_indices = @transform_5, window_bounds = array<i64: 3, 8>}, {pipeline_mode = #tpu.pipeline_mode<synchronous>, transform_indices = @transform_6, window_bounds = array<i64: 3, 1>}, {pipeline_mode = #tpu.pipeline_mode<synchronous>, transform_indices = @transform_7, window_bounds = array<i64: 9, 256>}, {transform_indices = @transform_8, window_bounds = array<i64: 1, 3, 256>}]} {
    %c0 = arith.constant 0 : index
    %c0_0 = arith.constant 0 : index
    %c0_1 = arith.constant 0 : index
    %0 = vector.load %arg1[%c0, %c0_0, %c0_1] : memref<1x4x256xf32, #tpu.memory_space<vmem>>, vector<1x4x256xf32>
    %1 = vector.shape_cast %0 : vector<1x4x256xf32> to vector<4x256xf32>
    %c0_2 = arith.constant 0 : index
    %c0_3 = arith.constant 0 : index
    %2 = vector.load %arg2[%c0_2, %c0_3] : memref<4x1xf32, #tpu.memory_space<vmem>>, vector<4x1xf32>
    %3 = vector.broadcast %2 : vector<4x1xf32> to vector<4x256xf32>
    %4 = arith.mulf %1, %3 : vector<4x256xf32>
    %c0_4 = arith.constant 0 : index
    %c0_5 = arith.constant 0 : index
    %5 = vector.load %arg3[%c0_4, %c0_5] : memref<4x1xf32, #tpu.memory_space<vmem>>, vector<4x1xf32>
    %6 = vector.broadcast %5 : vector<4x1xf32> to vector<4x256xf32>
    %7 = arith.addf %4, %6 : vector<4x256xf32>
    %cst = arith.constant 0.000000e+00 : f32
    %8 = vector.broadcast %cst : f32 to vector<4x256xf32>
    %9 = arith.maximumf %7, %8 : vector<4x256xf32>
    %c0_6 = arith.constant 0 : index
    %c0_7 = arith.constant 0 : index
    %10 = vector.load %arg8[%c0_6, %c0_7] : memref<9x256xf32, #tpu.memory_space<vmem>>, vector<9x256xf32>
    %c0_8 = arith.constant 0 : index
    %c0_9 = arith.constant 0 : index
    %c0_10 = arith.constant 0 : index
    %11 = vector.load %arg4[%c0_8, %c0_9, %c0_10] : memref<9x8x4xf32, #tpu.memory_space<vmem>>, vector<9x8x4xf32>
    %cst_11 = arith.constant 0.000000e+00 : f32
    %12 = vector.broadcast %cst_11 : f32 to vector<8x256xf32>
    %13 = vector.extract_strided_slice %9 {offsets = [0, 239], sizes = [4, 17], strides = [1, 1]} : vector<4x256xf32> to vector<4x17xf32>
    %14 = vector.extract_strided_slice %9 {offsets = [0, 0], sizes = [4, 239], strides = [1, 1]} : vector<4x256xf32> to vector<4x239xf32>
    %15 = tpu.concatenate %13, %14 in 1 : vector<4x17xf32>, vector<4x239xf32> -> vector<4x256xf32>
    %16 = vector.extract_strided_slice %10 {offsets = [0, 0], sizes = [1, 256], strides = [1, 1]} : vector<9x256xf32> to vector<1x256xf32>
    %17 = vector.broadcast %16 : vector<1x256xf32> to vector<4x256xf32>
    %18 = arith.mulf %15, %17 : vector<4x256xf32>
    %19 = vector.extract_strided_slice %11 {offsets = [0, 0, 0], sizes = [1, 8, 4], strides = [1, 1, 1]} : vector<9x8x4xf32> to vector<1x8x4xf32>
    %20 = vector.shape_cast %19 : vector<1x8x4xf32> to vector<8x4xf32>
    %cst_12 = arith.constant dense<0.000000e+00> : vector<8x256xf32>
    %21 = tpu.matmul %20, %18, %cst_12 {dimension_numbers = #tpu.dot_dimension_numbers<[1], [0], [0], [1], [0, 0, 1, 1], [], []>} : vector<8x4xf32>, vector<4x256xf32>, vector<8x256xf32> -> vector<8x256xf32>
    %22 = arith.addf %12, %21 : vector<8x256xf32>
    %23 = vector.extract_strided_slice %9 {offsets = [0, 240], sizes = [4, 16], strides = [1, 1]} : vector<4x256xf32> to vector<4x16xf32>
    %24 = vector.extract_strided_slice %9 {offsets = [0, 0], sizes = [4, 240], strides = [1, 1]} : vector<4x256xf32> to vector<4x240xf32>
    %25 = tpu.concatenate %23, %24 in 1 : vector<4x16xf32>, vector<4x240xf32> -> vector<4x256xf32>
    %26 = vector.extract_strided_slice %10 {offsets = [1, 0], sizes = [1, 256], strides = [1, 1]} : vector<9x256xf32> to vector<1x256xf32>
    %27 = vector.broadcast %26 : vector<1x256xf32> to vector<4x256xf32>
    %28 = arith.mulf %25, %27 : vector<4x256xf32>
    %29 = vector.extract_strided_slice %11 {offsets = [1, 0, 0], sizes = [1, 8, 4], strides = [1, 1, 1]} : vector<9x8x4xf32> to vector<1x8x4xf32>
    %30 = vector.shape_cast %29 : vector<1x8x4xf32> to vector<8x4xf32>
    %cst_13 = arith.constant dense<0.000000e+00> : vector<8x256xf32>
    %31 = tpu.matmul %30, %28, %cst_13 {dimension_numbers = #tpu.dot_dimension_numbers<[1], [0], [0], [1], [0, 0, 1, 1], [], []>} : vector<8x4xf32>, vector<4x256xf32>, vector<8x256xf32> -> vector<8x256xf32>
    %32 = arith.addf %22, %31 : vector<8x256xf32>
    %33 = vector.extract_strided_slice %9 {offsets = [0, 241], sizes = [4, 15], strides = [1, 1]} : vector<4x256xf32> to vector<4x15xf32>
    %34 = vector.extract_strided_slice %9 {offsets = [0, 0], sizes = [4, 241], strides = [1, 1]} : vector<4x256xf32> to vector<4x241xf32>
    %35 = tpu.concatenate %33, %34 in 1 : vector<4x15xf32>, vector<4x241xf32> -> vector<4x256xf32>
    %36 = vector.extract_strided_slice %10 {offsets = [2, 0], sizes = [1, 256], strides = [1, 1]} : vector<9x256xf32> to vector<1x256xf32>
    %37 = vector.broadcast %36 : vector<1x256xf32> to vector<4x256xf32>
    %38 = arith.mulf %35, %37 : vector<4x256xf32>
    %39 = vector.extract_strided_slice %11 {offsets = [2, 0, 0], sizes = [1, 8, 4], strides = [1, 1, 1]} : vector<9x8x4xf32> to vector<1x8x4xf32>
    %40 = vector.shape_cast %39 : vector<1x8x4xf32> to vector<8x4xf32>
    %cst_14 = arith.constant dense<0.000000e+00> : vector<8x256xf32>
    %41 = tpu.matmul %40, %38, %cst_14 {dimension_numbers = #tpu.dot_dimension_numbers<[1], [0], [0], [1], [0, 0, 1, 1], [], []>} : vector<8x4xf32>, vector<4x256xf32>, vector<8x256xf32> -> vector<8x256xf32>
    %42 = arith.addf %32, %41 : vector<8x256xf32>
    %43 = vector.extract_strided_slice %9 {offsets = [0, 255], sizes = [4, 1], strides = [1, 1]} : vector<4x256xf32> to vector<4x1xf32>
    %44 = vector.extract_strided_slice %9 {offsets = [0, 0], sizes = [4, 255], strides = [1, 1]} : vector<4x256xf32> to vector<4x255xf32>
    %45 = tpu.concatenate %43, %44 in 1 : vector<4x1xf32>, vector<4x255xf32> -> vector<4x256xf32>
    %46 = vector.extract_strided_slice %10 {offsets = [3, 0], sizes = [1, 256], strides = [1, 1]} : vector<9x256xf32> to vector<1x256xf32>
    %47 = vector.broadcast %46 : vector<1x256xf32> to vector<4x256xf32>
    %48 = arith.mulf %45, %47 : vector<4x256xf32>
    %49 = vector.extract_strided_slice %11 {offsets = [3, 0, 0], sizes = [1, 8, 4], strides = [1, 1, 1]} : vector<9x8x4xf32> to vector<1x8x4xf32>
    %50 = vector.shape_cast %49 : vector<1x8x4xf32> to vector<8x4xf32>
    %cst_15 = arith.constant dense<0.000000e+00> : vector<8x256xf32>
    %51 = tpu.matmul %50, %48, %cst_15 {dimension_numbers = #tpu.dot_dimension_numbers<[1], [0], [0], [1], [0, 0, 1, 1], [], []>} : vector<8x4xf32>, vector<4x256xf32>, vector<8x256xf32> -> vector<8x256xf32>
    %52 = arith.addf %42, %51 : vector<8x256xf32>
    %53 = vector.extract_strided_slice %11 {offsets = [4, 0, 0], sizes = [1, 8, 4], strides = [1, 1, 1]} : vector<9x8x4xf32> to vector<1x8x4xf32>
    %54 = vector.shape_cast %53 : vector<1x8x4xf32> to vector<8x4xf32>
    %cst_16 = arith.constant dense<0.000000e+00> : vector<8x256xf32>
    %55 = tpu.matmul %54, %9, %cst_16 {dimension_numbers = #tpu.dot_dimension_numbers<[1], [0], [0], [1], [0, 0, 1, 1], [], []>} : vector<8x4xf32>, vector<4x256xf32>, vector<8x256xf32> -> vector<8x256xf32>
    %56 = arith.addf %52, %55 : vector<8x256xf32>
    %57 = vector.extract_strided_slice %9 {offsets = [0, 1], sizes = [4, 255], strides = [1, 1]} : vector<4x256xf32> to vector<4x255xf32>
    %58 = vector.extract_strided_slice %9 {offsets = [0, 0], sizes = [4, 1], strides = [1, 1]} : vector<4x256xf32> to vector<4x1xf32>
    %59 = tpu.concatenate %57, %58 in 1 : vector<4x255xf32>, vector<4x1xf32> -> vector<4x256xf32>
    %60 = vector.extract_strided_slice %10 {offsets = [5, 0], sizes = [1, 256], strides = [1, 1]} : vector<9x256xf32> to vector<1x256xf32>
    %61 = vector.broadcast %60 : vector<1x256xf32> to vector<4x256xf32>
    %62 = arith.mulf %59, %61 : vector<4x256xf32>
    %63 = vector.extract_strided_slice %11 {offsets = [5, 0, 0], sizes = [1, 8, 4], strides = [1, 1, 1]} : vector<9x8x4xf32> to vector<1x8x4xf32>
    %64 = vector.shape_cast %63 : vector<1x8x4xf32> to vector<8x4xf32>
    %cst_17 = arith.constant dense<0.000000e+00> : vector<8x256xf32>
    %65 = tpu.matmul %64, %62, %cst_17 {dimension_numbers = #tpu.dot_dimension_numbers<[1], [0], [0], [1], [0, 0, 1, 1], [], []>} : vector<8x4xf32>, vector<4x256xf32>, vector<8x256xf32> -> vector<8x256xf32>
    %66 = arith.addf %56, %65 : vector<8x256xf32>
    %67 = vector.extract_strided_slice %9 {offsets = [0, 15], sizes = [4, 241], strides = [1, 1]} : vector<4x256xf32> to vector<4x241xf32>
    %68 = vector.extract_strided_slice %9 {offsets = [0, 0], sizes = [4, 15], strides = [1, 1]} : vector<4x256xf32> to vector<4x15xf32>
    %69 = tpu.concatenate %67, %68 in 1 : vector<4x241xf32>, vector<4x15xf32> -> vector<4x256xf32>
    %70 = vector.extract_strided_slice %10 {offsets = [6, 0], sizes = [1, 256], strides = [1, 1]} : vector<9x256xf32> to vector<1x256xf32>
    %71 = vector.broadcast %70 : vector<1x256xf32> to vector<4x256xf32>
    %72 = arith.mulf %69, %71 : vector<4x256xf32>
    %73 = vector.extract_strided_slice %11 {offsets = [6, 0, 0], sizes = [1, 8, 4], strides = [1, 1, 1]} : vector<9x8x4xf32> to vector<1x8x4xf32>
    %74 = vector.shape_cast %73 : vector<1x8x4xf32> to vector<8x4xf32>
    %cst_18 = arith.constant dense<0.000000e+00> : vector<8x256xf32>
    %75 = tpu.matmul %74, %72, %cst_18 {dimension_numbers = #tpu.dot_dimension_numbers<[1], [0], [0], [1], [0, 0, 1, 1], [], []>} : vector<8x4xf32>, vector<4x256xf32>, vector<8x256xf32> -> vector<8x256xf32>
    %76 = arith.addf %66, %75 : vector<8x256xf32>
    %77 = vector.extract_strided_slice %9 {offsets = [0, 16], sizes = [4, 240], strides = [1, 1]} : vector<4x256xf32> to vector<4x240xf32>
    %78 = vector.extract_strided_slice %9 {offsets = [0, 0], sizes = [4, 16], strides = [1, 1]} : vector<4x256xf32> to vector<4x16xf32>
    %79 = tpu.concatenate %77, %78 in 1 : vector<4x240xf32>, vector<4x16xf32> -> vector<4x256xf32>
    %80 = vector.extract_strided_slice %10 {offsets = [7, 0], sizes = [1, 256], strides = [1, 1]} : vector<9x256xf32> to vector<1x256xf32>
    %81 = vector.broadcast %80 : vector<1x256xf32> to vector<4x256xf32>
    %82 = arith.mulf %79, %81 : vector<4x256xf32>
    %83 = vector.extract_strided_slice %11 {offsets = [7, 0, 0], sizes = [1, 8, 4], strides = [1, 1, 1]} : vector<9x8x4xf32> to vector<1x8x4xf32>
    %84 = vector.shape_cast %83 : vector<1x8x4xf32> to vector<8x4xf32>
    %cst_19 = arith.constant dense<0.000000e+00> : vector<8x256xf32>
    %85 = tpu.matmul %84, %82, %cst_19 {dimension_numbers = #tpu.dot_dimension_numbers<[1], [0], [0], [1], [0, 0, 1, 1], [], []>} : vector<8x4xf32>, vector<4x256xf32>, vector<8x256xf32> -> vector<8x256xf32>
    %86 = arith.addf %76, %85 : vector<8x256xf32>
    %87 = vector.extract_strided_slice %9 {offsets = [0, 17], sizes = [4, 239], strides = [1, 1]} : vector<4x256xf32> to vector<4x239xf32>
    %88 = vector.extract_strided_slice %9 {offsets = [0, 0], sizes = [4, 17], strides = [1, 1]} : vector<4x256xf32> to vector<4x17xf32>
    %89 = tpu.concatenate %87, %88 in 1 : vector<4x239xf32>, vector<4x17xf32> -> vector<4x256xf32>
    %90 = vector.extract_strided_slice %10 {offsets = [8, 0], sizes = [1, 256], strides = [1, 1]} : vector<9x256xf32> to vector<1x256xf32>
    %91 = vector.broadcast %90 : vector<1x256xf32> to vector<4x256xf32>
    %92 = arith.mulf %89, %91 : vector<4x256xf32>
    %93 = vector.extract_strided_slice %11 {offsets = [8, 0, 0], sizes = [1, 8, 4], strides = [1, 1, 1]} : vector<9x8x4xf32> to vector<1x8x4xf32>
    %94 = vector.shape_cast %93 : vector<1x8x4xf32> to vector<8x4xf32>
    %cst_20 = arith.constant dense<0.000000e+00> : vector<8x256xf32>
    %95 = tpu.matmul %94, %92, %cst_20 {dimension_numbers = #tpu.dot_dimension_numbers<[1], [0], [0], [1], [0, 0, 1, 1], [], []>} : vector<8x4xf32>, vector<4x256xf32>, vector<8x256xf32> -> vector<8x256xf32>
    %96 = arith.addf %86, %95 : vector<8x256xf32>
    %c0_21 = arith.constant 0 : index
    %c0_22 = arith.constant 0 : index
    %97 = vector.load %arg5[%c0_21, %c0_22] : memref<8x1xf32, #tpu.memory_space<vmem>>, vector<8x1xf32>
    %98 = vector.broadcast %97 : vector<8x1xf32> to vector<8x256xf32>
    %99 = arith.addf %96, %98 : vector<8x256xf32>
    %cst_23 = arith.constant 0.000000e+00 : f32
    %100 = vector.broadcast %cst_23 : f32 to vector<8x256xf32>
    %101 = arith.maximumf %99, %100 : vector<8x256xf32>
    %c0_24 = arith.constant 0 : index
    %c0_25 = arith.constant 0 : index
    %102 = vector.load %arg6[%c0_24, %c0_25] : memref<3x8xf32, #tpu.memory_space<vmem>>, vector<3x8xf32>
    %cst_26 = arith.constant dense<0.000000e+00> : vector<3x256xf32>
    %103 = tpu.matmul %102, %101, %cst_26 {dimension_numbers = #tpu.dot_dimension_numbers<[1], [0], [0], [1], [0, 0, 1, 1], [], []>} : vector<3x8xf32>, vector<8x256xf32>, vector<3x256xf32> -> vector<3x256xf32>
    %c0_27 = arith.constant 0 : index
    %c0_28 = arith.constant 0 : index
    %104 = vector.load %arg7[%c0_27, %c0_28] : memref<3x1xf32, #tpu.memory_space<vmem>>, vector<3x1xf32>
    %105 = vector.broadcast %104 : vector<3x1xf32> to vector<3x256xf32>
    %106 = arith.addf %103, %105 : vector<3x256xf32>
    %c0_29 = arith.constant 0 : index
    %c0_30 = arith.constant 0 : index
    %c0_31 = arith.constant 0 : index
    %107 = vector.load %arg9[%c0_29, %c0_30, %c0_31] : memref<1x3x256xf32, #tpu.memory_space<vmem>>, vector<1x3x256xf32>
    %108 = vector.shape_cast %107 : vector<1x3x256xf32> to vector<3x256xf32>
    %109 = vector.shape_cast %106 : vector<3x256xf32> to vector<1x3x256xf32>
    tpu.vector_store %arg9[%c0_29, %c0_30, %c0_31], %109 {strides = array<i32>} : memref<1x3x256xf32, #tpu.memory_space<vmem>>, vector<1x3x256xf32>,
    return
  }
  func.func @transform_0(%arg0: i32) -> (i32, i32, i32) {
    %c0_i32 = arith.constant 0 : i32
    %c0_i32_0 = arith.constant 0 : i32
    %c0_i32_1 = arith.constant 0 : i32
    return %arg0, %c0_i32, %c0_i32_0 : i32, i32, i32
  }
  func.func @transform_1(%arg0: i32) -> (i32, i32) {
    %c0_i32 = arith.constant 0 : i32
    %c0_i32_0 = arith.constant 0 : i32
    %c0_i32_1 = arith.constant 0 : i32
    return %c0_i32, %c0_i32_0 : i32, i32
  }
  func.func @transform_2(%arg0: i32) -> (i32, i32) {
    %c0_i32 = arith.constant 0 : i32
    %c0_i32_0 = arith.constant 0 : i32
    %c0_i32_1 = arith.constant 0 : i32
    return %c0_i32, %c0_i32_0 : i32, i32
  }
  func.func @transform_3(%arg0: i32) -> (i32, i32, i32) {
    %c0_i32 = arith.constant 0 : i32
    %c0_i32_0 = arith.constant 0 : i32
    %c0_i32_1 = arith.constant 0 : i32
    %c0_i32_2 = arith.constant 0 : i32
    return %c0_i32, %c0_i32_0, %c0_i32_1 : i32, i32, i32
  }
  func.func @transform_4(%arg0: i32) -> (i32, i32) {
    %c0_i32 = arith.constant 0 : i32
    %c0_i32_0 = arith.constant 0 : i32
    %c0_i32_1 = arith.constant 0 : i32
    return %c0_i32, %c0_i32_0 : i32, i32
  }
  func.func @transform_5(%arg0: i32) -> (i32, i32) {
    %c0_i32 = arith.constant 0 : i32
    %c0_i32_0 = arith.constant 0 : i32
    %c0_i32_1 = arith.constant 0 : i32
    return %c0_i32, %c0_i32_0 : i32, i32
  }
  func.func @transform_6(%arg0: i32) -> (i32, i32) {
    %c0_i32 = arith.constant 0 : i32
    %c0_i32_0 = arith.constant 0 : i32
    %c0_i32_1 = arith.constant 0 : i32
    return %c0_i32, %c0_i32_0 : i32, i32
  }
  func.func @transform_7(%arg0: i32) -> (i32, i32) {
    %c0_i32 = arith.constant 0 : i32
    %c0_i32_0 = arith.constant 0 : i32
    %c0_i32_1 = arith.constant 0 : i32
    return %c0_i32, %c0_i32_0 : i32, i32
  }
  func.func @transform_8(%arg0: i32) -> (i32, i32, i32) {
    %c0_i32 = arith.constant 0 : i32
    %c0_i32_0 = arith.constant 0 : i32
    %c0_i32_1 = arith.constant 0 : i32
    return %arg0, %c0_i32, %c0_i32_0 : i32, i32, i32
  }
}

</mosaic_0001>

<bundles_post_ra>
// kernel: tpu_custom_call.1
= control target key start
LH: loop header
LB: loop body
LE: loop exit
PB: predicated region body
PF: predicated region fallthrough
CT: control target
= control target key end

     0   :  { %s1228_s27 = smov 0   ;;  %s1390_s0 = inlined_call_operand.vmem [shape: f32[2,4,256], index: 0, kind: input, shape index: {}]   ;;  %s1391_s1 = inlined_call_operand.vmem [shape: f32[4,1], index: 1, kind: input, shape index: {}]   ;;  %s1392_s2 = inlined_call_operand.vmem [shape: f32[4,1], index: 2, kind: input, shape index: {}]   ;;  %s1393_s3 = inlined_call_operand.vmem [shape: f32[9,8,4], index: 3, kind: input, shape index: {}]   ;;  %s1394_s4 = inlined_call_operand.vmem [shape: f32[8,1], index: 4, kind: input, shape index: {}]   ;;  %s1395_s5 = inlined_call_operand.vmem [shape: f32[3,8], index: 5, kind: input, shape index: {}]   ;;  %s1396_s6 = inlined_call_operand.vmem [shape: f32[3,1], index: 6, kind: input, shape index: {}]   ;;  %s1397_s7 = inlined_call_operand.vmem [shape: f32[9,256], index: 7, kind: input, shape index: {}]   ;;  %s1398_s8 = inlined_call_operand.vmem [shape: f32[2,3,256], index: 8, kind: output, shape index: {}]  }
   0x1 LB: > { %s1092_s28 = sadd.s32 4294967295, %s1171_s27   ;;  %p1096_p0 = scmp.ge.s32.totalorder %s1171_s27, 1  ;;  %s1171_s27 = sphi %s1228_s27, %s18_s27  }
   0x2   : > { %p262_p1 = scmp.lt.s32.totalorder %s1171_s27, 3 }
   0x4   : > { %p263_p2 = pnand %p1096_p0, %p262_p1 }
   0x5   : > { %p296_p3 = scmp.lt.s32.totalorder (!%p263_p2), %s1092_s28, 1  ;;  %s1175_s15 = smov (!%p263_p2), 17  }
   0x6   : > { %266 = sbr.rel (%p263_p2) target bundleno = 668 (0x29c), region = 52  ;;  %s1176_s16 = smov (!%p263_p2), 16  }
   0x7   : > { %s1177_s17 = smov (!%p263_p2), 15   ;;  %s1178_s18 = smov (!%p263_p2), 1  }
   0x8   : > { %s1179_s19 = smov (!%p263_p2), 127   ;;  %s1180_s20 = smov (!%p263_p2), 113  }
   0x9   : > { %s1181_s21 = smov (!%p263_p2), 112   ;;  %s1182_s26 = smov (!%p263_p2), 111  }
   0xb   : > { %v307_v0 = vld [vmem:[%s1391_s1] sm:$0xf]  ;;  %v1173_v1 = vmov 0   ;;  %s1400_s28 = smov (!%p296_p3, %s1092_s28), 1  ;;  %v1174_v3 = vmov 839922192  }
   0xc   : > { %1161 = vset.pattern.permute.xlu0 %v1173_v1  ;;  %1162 = vset.pattern.permute.xlu2 %v1173_v1  ;;  %v318_v2 = vld [vmem:[%s1392_s2] sm:$0xf]  ;;  %v313_v4 = vunpack.c.l.s4 %v1174_v3  ;;  %s1141_s11 = sshll.u32 %s1400_s28, 3  ;;  %v1275_v38 = vld [vmem:[%s1397_s7 + $0x8] sm:$0xff]  ;;  %vm356_vm0 = vcmask 138240   ;;  %vm377_vm1 = vcmask 130048  }
   0xd   : > { %310 = vperm.xlu0 %1161, %v307_v0   ;;  %s300_s14 = scalar_lea.vmem %s1390_s0, %s1141_s11  ;;  %v1280_v39 = vld [vmem:[%s1397_s7] sm:$0xff]  ;;  %v383_v42 = vperm.slane %v1275_v38, 1  ;;  %vm390_vm2 = vcmask 1043456   ;;  %v335_v51 = vld [vmem:[%s1393_s3 + $0x8] sm:$0xff]  ;;  %vm386_vm3 = vcmask 31744   ;;  %v362_v53 = vperm.slane %v1275_v38, 0 }
   0xe   : > { %v314_v6 = vunpack.c.0.s8 %v313_v4  ;;  %v306_v8 = vld [vmem:[%s300_s14] sm:$0xff]  ;;  %v361_v43 = vperm.slane %v1280_v39, 0  ;;  %v382_v58 = vperm.slane %v1280_v39, 1  ;;  %vm498_vm4 = vcmask 121856  }
   0xf   : > { %v981_v57 = vld [vmem:[%s1396_s6] sm:$0x7]  ;;  %v503_v62 = vperm.slane %v1280_v39, 2  ;;  %v504_v3 = vperm.slane %v1275_v38, 2  ;;  %vm570_vm5 = vcmask 7168   ;;  %vm689_vm6 = vcmask 1039360  }
  0x10   : > { %vm761_vm7 = vcmask 924672   ;;  %vm833_vm8 = vcmask 916480   ;;  %vm905_vm9 = vcmask 908288   ;;  %vm987_vm10 = vcmask 64512  }
  0x15   : > { %321 = vperm.xlu0 %1161, %v318_v2  }
  0x7f   : > { %v311_v5 = vpop.permute.xlu0 %310 }
  0x80   : > { %v315_v7 = vperm.slane %v311_v5, %v314_v6 }
  0x82   : > { %v317_v10 = vmul.f32 %v315_v7, %v306_v8  ;;  %v334_v7 = vld [vmem:[%s1393_s3] sm:$0xff] }
  0x87   : > { %v322_v9 = vpop.permute.xlu0 %321 }
  0x88   : > { %v326_v11 = vperm.slane %v322_v9, %v314_v6  ;;  %v575_v9 = vperm.slane %v1280_v39, 3 }
  0x8a   : > { %v328_v12 = vadd.f32 %v326_v11, %v317_v10  ;;  %v576_v10 = vperm.slane %v1275_v38, 3 }
  0x8c   : > { %v1250_v13 = vmax.f32 %v328_v12, 0.0 }
  0x8e   : > { %344 = vst [vmem:[#allocation1] ss:$2 sm:$0xff] %v1250_v13 }
  0x95   : > { %v345_v14 = vld.sshfl [vmem:[#allocation1 + $0x8] sm:$0xff pattern:$0x75316420] }
  0x96   : > { %346 = vrot.lane.b32.xlu0 %v345_v14, %s1175_s15  ;;  %349 = vst [vmem:[#allocation1] ss:$2 sm:$0xff] %v1250_v13 }
  0x9d   : > { %v350_v15 = vld.sshfl [vmem:[#allocation1] sm:$0xff pattern:$0x75316420]  ;;  %v351_v16 = vld.sshfl [vmem:[#allocation1 + $0x8] sm:$0xff pattern:$0x75316420] }
  0x9e   : > { %352 = vrot.lane.b32.xlu1 %v350_v15, %s1175_s15  ;;  %365 = vst [vmem:[#allocation1] ss:$2 sm:$0xff] %v1250_v13 }
  0xa5   : > { %v366_v17 = vld.sshfl [vmem:[#allocation1 + $0x8] sm:$0xff pattern:$0x75316420] }
  0xa6   : > { %354 = vrot.lane.b32.xlu1 %v351_v16, %s1175_s15  ;;  %370 = vst [vmem:[#allocation1] ss:$2 sm:$0xff] %v1250_v13 }
  0xad   : > { %v371_v18 = vld.sshfl [vmem:[#allocation1] sm:$0xff pattern:$0x75316420]  ;;  %v372_v19 = vld.sshfl [vmem:[#allocation1 + $0x8] sm:$0xff pattern:$0x75316420] }
  0xae   : > { %367 = vrot.lane.b32.xlu1 %v366_v17, %s1176_s16  ;;  %373 = vrot.lane.b32.xlu2 %v371_v18, %s1176_s16  ;;  %486 = vst [vmem:[#allocation1] ss:$2 sm:$0xff] %v1250_v13  ;;  %v336_v17 = vld [vmem:[%s1393_s3 + $0x10] sm:$0xff]  ;;  %v337_v18 = vld [vmem:[%s1393_s3 + $0x18] sm:$0xff] }
  0xb5   : > { %v487_v20 = vld.sshfl [vmem:[#allocation1 + $0x8] sm:$0xff pattern:$0x75316420] }
  0xb6   : > { %375 = vrot.lane.b32.xlu2 %v372_v19, %s1176_s16  ;;  %488 = vrot.lane.b32.xlu0 %v487_v20, %s1177_s17  ;;  %491 = vst [vmem:[#allocation1] ss:$2 sm:$0xff] %v1250_v13  ;;  %v338_v19 = vld [vmem:[%s1393_s3 + $0x20] sm:$0xff]  ;;  %v699_v20 = vperm.slane %v1280_v39, 5 }
  0xbd   : > { %v493_v21 = vld.sshfl [vmem:[#allocation1 + $0x8] sm:$0xff pattern:$0x75316420]  ;;  %v492_v22 = vld.sshfl [vmem:[#allocation1] sm:$0xff pattern:$0x75316420] }
  0xbe   : > { %496 = vrot.lane.b32.xlu0 %v493_v21, %s1177_s17  ;;  %494 = vrot.lane.b32.xlu2 %v492_v22, %s1177_s17  ;;  %558 = vst [vmem:[#allocation1] ss:$2 sm:$0xff] %v1250_v13 }
  0xc5   : > { %v559_v23 = vld.sshfl [vmem:[#allocation1 + $0x8] sm:$0xff pattern:$0x75316420] }
  0xc6   : > { %560 = vrot.lane.b32.xlu1 %v559_v23, %s1178_s18  ;;  %563 = vst [vmem:[#allocation1] ss:$2 sm:$0xff] %v1250_v13 }
  0xcd   : > { %v565_v24 = vld.sshfl [vmem:[#allocation1 + $0x8] sm:$0xff pattern:$0x75316420]  ;;  %v564_v25 = vld.sshfl [vmem:[#allocation1] sm:$0xff pattern:$0x75316420] }
  0xce   : > { %568 = vrot.lane.b32.xlu2 %v565_v24, %s1178_s18  ;;  %566 = vrot.lane.b32.xlu1 %v564_v25, %s1178_s18  ;;  %630 = vst [vmem:[#allocation1] ss:$2 sm:$0xff] %v1250_v13  ;;  %v339_v25 = vld [vmem:[%s1393_s3 + $0x28] sm:$0xff] }
  0xd5   : > { %v1261_v26 = vld.sshfl [vmem:[#allocation1] sm:$0xff pattern:$0x75316420]  ;;  %v1263_v27 = vld.sshfl [vmem:[#allocation1 + $0x8] sm:$0xff pattern:$0x75316420] }
  0xd6   : > { %682 = vst [vmem:[#allocation1] ss:$2 sm:$0xff] %v1250_v13 }
  0xdd   : > { %v684_v28 = vld.sshfl [vmem:[#allocation1 + $0x8] sm:$0xff pattern:$0x75316420]  ;;  %v683_v29 = vld.sshfl [vmem:[#allocation1] sm:$0xff pattern:$0x75316420] }
  0xde   : > { %687 = vrot.lane.b32.xlu2 %v684_v28, %s1179_s19  ;;  %685 = vrot.lane.b32.xlu1 %v683_v29, %s1179_s19  ;;  %693 = vst [vmem:[#allocation1] ss:$2 sm:$0xff] %v1250_v13 }
  0xe5   : > { %v694_v30 = vld.sshfl [vmem:[#allocation1] sm:$0xff pattern:$0x75316420] }
  0xe6   : > { %695 = vrot.lane.b32.xlu0 %v694_v30, %s1179_s19  ;;  %754 = vst [vmem:[#allocation1] ss:$2 sm:$0xff] %v1250_v13  ;;  %v771_v30 = vperm.slane %v1280_v39, 6  ;;  %s305_s19 = scalar_lea.vmem %s1398_s8, %s1141_s11 }
  0xed   : > { %v756_v31 = vld.sshfl [vmem:[#allocation1 + $0x8] sm:$0xff pattern:$0x75316420]  ;;  %v755_v32 = vld.sshfl [vmem:[#allocation1] sm:$0xff pattern:$0x75316420] }
  0xee   : > { %759 = vrot.lane.b32.xlu2 %v756_v31, %s1180_s20  ;;  %757 = vrot.lane.b32.xlu0 %v755_v32, %s1180_s20  ;;  %765 = vst [vmem:[#allocation1] ss:$2 sm:$0xff] %v1250_v13 }
  0xf5   : > { %v766_v33 = vld.sshfl [vmem:[#allocation1] sm:$0xff pattern:$0x75316420] }
  0xf6   : > { %767 = vrot.lane.b32.xlu0 %v766_v33, %s1180_s20  ;;  %826 = vst [vmem:[#allocation1] ss:$2 sm:$0xff] %v1250_v13 }
  0xfd   : > { %v828_v34 = vld.sshfl [vmem:[#allocation1 + $0x8] sm:$0xff pattern:$0x75316420]  ;;  %v827_v35 = vld.sshfl [vmem:[#allocation1] sm:$0xff pattern:$0x75316420] }
  0xfe   : > { %831 = vrot.lane.b32.xlu1 %v828_v34, %s1181_s21  ;;  %837 = vst [vmem:[#allocation1] ss:$2 sm:$0xff] %v1250_v13 }
 0x105   : > { %v838_v36 = vld.sshfl [vmem:[#allocation1] sm:$0xff pattern:$0x75316420] }
 0x106   : > { %829 = vrot.lane.b32.xlu1 %v827_v35, %s1181_s21  ;;  %839 = vrot.lane.b32.xlu2 %v838_v36, %s1181_s21  ;;  %898 = vst [vmem:[#allocation1] ss:$2 sm:$0xff] %v1250_v13  ;;  %v340_v35 = vld [vmem:[%s1393_s3 + $0x30] sm:$0xff]  ;;  %v772_v36 = vperm.slane %v1275_v38, 6 }
 0x108   : > { %v374_v37 = vpop.permute.xlu2 %373  ;;  %v347_v44 = vpop.permute.xlu0 %346 }
 0x10d   : > { %v900_v40 = vld.sshfl [vmem:[#allocation1 + $0x8] sm:$0xff pattern:$0x75316420]  ;;  %v899_v41 = vld.sshfl [vmem:[#allocation1] sm:$0xff pattern:$0x75316420] }
 0x10e   : > { %903 = vrot.lane.b32.xlu2 %v900_v40, %s1182_s26  ;;  %901 = vrot.lane.b32.xlu1 %v899_v41, %s1182_s26  ;;  %909 = vst [vmem:[#allocation1] ss:$2 sm:$0xff] %v1250_v13 }
 0x110   : > { %v353_v45 = vpop.permute.xlu1 %352  ;;  %v376_v46 = vpop.permute.xlu2 %375 }
 0x111   : > { %v360_v47 = vsel %vm356_vm0, %v347_v44, %v353_v45  ;;  %v378_v48 = vsel %vm377_vm1, %v374_v37, %v376_v46 }
 0x112   : > { %v385_v49 = vmul.f32 %v383_v42, %v378_v48  ;;  %v363_v50 = vmul.f32 %v361_v43, %v360_v47  ;;  %v844_v42 = vperm.slane %v1275_v38, 7  ;;  %v341_v48 = vld [vmem:[%s1393_s3 + $0x38] sm:$0xff] }
 0x114   : > { %1103 = vmatpush.msk.msra.mxu1 %vm390_vm2, %v385_v49  ;;  %1105 = vmatpush.msk.msra.mxu2 %vm390_vm2, %v363_v50  ;;  %v843_v49 = vperm.slane %v1280_v39, 7  ;;  %v342_v39 = vld [vmem:[%s1393_s3 + $0x40] sm:$0xff] }
 0x115   : > { %v910_v52 = vld.sshfl [vmem:[#allocation1] sm:$0xff pattern:$0x75316420]  ;;  %1104 = vmatmul.msk.f32.vlgmr.msra.gmra.mxu1 %vm386_vm3, %v335_v51  ;;  %1106 = vmatmul.msk.f32.vlgmr.msra.gmra.mxu2 %vm386_vm3, %v334_v7 }
 0x116   : > { %911 = vrot.lane.b32.xlu0 %v910_v52, %s1182_s26  ;;  %v1163_v52 = vld [vmem:[%s1397_s7 + $0x10] ss:$0 sm:$0xff] }
 0x118   : > { %v355_v54 = vpop.permute.xlu1 %354  ;;  %v495_v63 = vpop.permute.xlu2 %494 }
 0x119   : > { %v357_v55 = vsel %vm356_vm0, %v353_v45, %v355_v54  ;;  %v970_v45 = vld [vmem:[%s1394_s4] sm:$0xff] }
 0x11a   : > { %v364_v56 = vmul.f32 %v362_v53, %v357_v55  ;;  %973 = vperm.xlu2 %1162, %v970_v45  }
 0x11c   : > { %1107 = vmatpush.msk.msra.mxu3 %vm390_vm2, %v364_v56 }
 0x11d   : > { %1108 = vmatmul.msk.f32.vlgmr.msra.gmra.mxu3 %vm386_vm3, %v334_v7 }
 0x11e   : > { %984 = vperm.xlu0 %1161, %v981_v57   ;;  %v1164_v57 = vld [vmem:[%s1397_s7 + $0x18] ss:$0 sm:$0xff] }
 0x120   : > { %v368_v59 = vpop.permute.xlu1 %367 }
 0x121   : > { %v381_v60 = vsel %vm377_vm1, %v368_v59, %v374_v37 }
 0x122   : > { %v384_v61 = vmul.f32 %v382_v58, %v381_v60 }
 0x124   : > { %1101 = vmatpush.msk.msra.mxu0 %vm390_vm2, %v384_v61 }
 0x125   : > { %1102 = vmatmul.msk.f32.vlgmr.msra.gmra.mxu0 %vm386_vm3, %v335_v51 }
 0x128   : > { %v489_v0 = vpop.permute.xlu0 %488  ;;  %v569_v11 = vpop.permute.xlu2 %568 }
 0x129   : > { %v502_v1 = vsel %vm498_vm4, %v489_v0, %v495_v63 }
 0x12a   : > { %v505_v2 = vmul.f32 %v503_v62, %v502_v1 }
 0x12c   : > { %1109 = vmatpush.msk.msrb.mxu0 %vm390_vm2, %v505_v2 }
 0x12d   : > { %1110 = vmatmul.msk.f32.vlgmr.msrb.gmra.mxu0 %vm386_vm3, %v336_v17 }
 0x12e   : > { %1117 = vmatpush.msk.msra.mxu0 %vm390_vm2, %v1261_v26  ;;  %v700_v26 = vperm.slane %v1275_v38, 5 }
 0x130   : > { %v497_v4 = vpop.permute.xlu0 %496 }
 0x131   : > { %v499_v5 = vsel %vm498_vm4, %v495_v63, %v497_v4 }
 0x132   : > { %v506_v6 = vmul.f32 %v504_v3, %v499_v5 }
 0x134   : > { %1111 = vmatpush.msk.msrb.mxu1 %vm390_vm2, %v506_v6 }
 0x135   : > { %1112 = vmatmul.msk.f32.vlgmr.msrb.gmra.mxu1 %vm386_vm3, %v336_v17  ;;  %1118 = vmatmul.msk.f32.vlgmr.msra.gmra.mxu0 %vm386_vm3, %v338_v19 }
 0x136   : > { %1119 = vmatpush.msk.msra.mxu1 %vm390_vm2, %v1263_v27 }
 0x138   : > { %v561_v8 = vpop.permute.xlu1 %560  ;;  %v688_v21 = vpop.permute.xlu2 %687 }
 0x13d   : > { %1120 = vmatmul.msk.f32.vlgmr.msra.gmra.mxu1 %vm386_vm3, %v338_v19 }
 0x140   : > { %v567_v12 = vpop.permute.xlu1 %566 }
 0x141   : > { %v571_v13 = vsel %vm570_vm5, %v567_v12, %v569_v11  ;;  %v574_v14 = vsel %vm570_vm5, %v561_v8, %v567_v12 }
 0x142   : > { %v577_v15 = vmul.f32 %v575_v9, %v574_v14  ;;  %v578_v16 = vmul.f32 %v576_v10, %v571_v13 }
 0x144   : > { %1113 = vmatpush.msk.msrb.mxu2 %vm390_vm2, %v577_v15  ;;  %1115 = vmatpush.msk.msrb.mxu3 %vm390_vm2, %v578_v16 }
 0x145   : > { %1116 = vmatmul.msk.f32.vlgmr.msrb.gmra.mxu3 %vm386_vm3, %v337_v18  ;;  %1114 = vmatmul.msk.f32.vlgmr.msrb.gmra.mxu2 %vm386_vm3, %v337_v18 }
 0x148   : > { %v760_v31 = vpop.permute.xlu2 %759 }
 0x150   : > { %v686_v22 = vpop.permute.xlu1 %685 }
 0x151   : > { %v690_v23 = vsel %vm689_vm6, %v686_v22, %v688_v21 }
 0x152   : > { %v701_v24 = vmul.f32 %v699_v20, %v690_v23 }
 0x154   : > { %1121 = vmatpush.msk.msra.mxu2 %vm390_vm2, %v701_v24 }
 0x155   : > { %1122 = vmatmul.msk.f32.vlgmr.msra.gmra.mxu2 %vm386_vm3, %v339_v25 }
 0x158   : > { %v696_v27 = vpop.permute.xlu0 %695 }
 0x159   : > { %v698_v28 = vsel %vm689_vm6, %v688_v21, %v696_v27 }
 0x15a   : > { %v702_v29 = vmul.f32 %v700_v26, %v698_v28 }
 0x15c   : > { %1123 = vmatpush.msk.msra.mxu3 %vm390_vm2, %v702_v29 }
 0x15d   : > { %1124 = vmatmul.msk.f32.vlgmr.msra.gmra.mxu3 %vm386_vm3, %v339_v25 }
 0x160   : > { %v758_v32 = vpop.permute.xlu0 %757  ;;  %v840_v43 = vpop.permute.xlu2 %839 }
 0x161   : > { %v762_v33 = vsel %vm761_vm7, %v758_v32, %v760_v31 }
 0x162   : > { %v773_v34 = vmul.f32 %v771_v30, %v762_v33 }
 0x164   : > { %1125 = vmatpush.msk.msrb.mxu0 %vm390_vm2, %v773_v34 }
 0x165   : > { %1126 = vmatmul.msk.f32.vlgmr.msrb.gmra.mxu0 %vm386_vm3, %v340_v35 }
 0x168   : > { %v768_v37 = vpop.permute.xlu0 %767  ;;  %v904_v53 = vpop.permute.xlu2 %903 }
 0x169   : > { %v770_v40 = vsel %vm761_vm7, %v760_v31, %v768_v37  ;;  %v980_v31 = vld [vmem:[%s1395_s5] sm:$0x7] }
 0x16a   : > { %v774_v41 = vmul.f32 %v772_v36, %v770_v40 }
 0x16c   : > { %1127 = vmatpush.msk.msrb.mxu1 %vm390_vm2, %v774_v41 }
 0x16d   : > { %1128 = vmatmul.msk.f32.vlgmr.msrb.gmra.mxu1 %vm386_vm3, %v340_v35 }
 0x170   : > { %v832_v44 = vpop.permute.xlu1 %831 }
 0x171   : > { %v842_v46 = vsel %vm833_vm8, %v832_v44, %v840_v43 }
 0x172   : > { %v846_v47 = vmul.f32 %v844_v42, %v842_v46 }
 0x174   : > { %1131 = vmatpush.msk.msrb.mxu3 %vm390_vm2, %v846_v47  ;;  %v974_v22 = vpop.permute.xlu2 %973 }
 0x175   : > { %1132 = vmatmul.msk.f32.vlgmr.msrb.gmra.mxu3 %vm386_vm3, %v341_v48 }
 0x178   : > { %v830_v38 = vpop.permute.xlu1 %829 }
 0x179   : > { %v834_v50 = vsel %vm833_vm8, %v830_v38, %v832_v44 }
 0x17a   : > { %v845_v51 = vmul.f32 %v843_v49, %v834_v50 }
 0x17c   : > { %1129 = vmatpush.msk.msrb.mxu2 %vm390_vm2, %v845_v51 }
 0x17d   : > { %1130 = vmatmul.msk.f32.vlgmr.msrb.gmra.mxu2 %vm386_vm3, %v341_v48 }
 0x180   : > { %v902_v54 = vpop.permute.xlu1 %901 }
 0x181   : > { %v906_v55 = vsel %vm905_vm9, %v902_v54, %v904_v53 }
 0x182   : > { %v917_v56 = vmul.f32 %v1163_v52, %v906_v55 }
 0x184   : > { %1133 = vmatpush.msk.msra.mxu0 %vm390_vm2, %v917_v56 }
 0x185   : > { %1134 = vmatmul.msk.f32.vlgmr.msra.gmra.mxu0 %vm386_vm3, %v342_v39 }
 0x188   : > { %v912_v58 = vpop.permute.xlu0 %911 }
 0x189   : > { %v914_v59 = vsel %vm905_vm9, %v904_v53, %v912_v58 }
 0x18a   : > { %v918_v60 = vmul.f32 %v1164_v57, %v914_v59 }
 0x18c   : > { %1135 = vmatpush.msk.msra.mxu1 %vm390_vm2, %v918_v60 }
 0x18d   : > { %1136 = vmatmul.msk.f32.vlgmr.msra.gmra.mxu1 %vm386_vm3, %v342_v39 }
 0x190   : > { %v985_v37 = vpop.permute.xlu0 %984 }
 0x192   : > { %v434_v62 = vpop.f32.mrf.mxu1 }
 0x198   : > { %v463_v63 = vpop.f32.mrf.mxu2 }
 0x1a0   : > { %v483_v1 = vpop.f32.mrf.mxu3 }
 0x1a1   : > { %v484_v8 = vadd.f32 %v483_v1, %v434_v62 }
 0x1a2   : > { %v414_v61 = vpop.f32.mrf.mxu0 }
 0x1a3   : > { %v464_v2 = vadd.f32 %v463_v63, %v414_v61 }
 0x1aa   : > { %v533_v0 = vpop.f32.mrf.mxu0 }
 0x1ab   : > { %v556_v5 = vadd.f32 %v533_v0, %v464_v2 }
 0x1b2   : > { %v553_v3 = vpop.f32.mrf.mxu1  ;;  %v657_v6 = vpop.f32.mrf.mxu0 }
 0x1b3   : > { %v557_v10 = vadd.f32 %v553_v3, %v484_v8 }
 0x1ba   : > { %v677_v12 = vpop.f32.mrf.mxu1 }
 0x1c8   : > { %v605_v4 = vpop.f32.mrf.mxu2  ;;  %v625_v7 = vpop.f32.mrf.mxu3 }
 0x1c9   : > { %v628_v9 = vadd.f32 %v605_v4, %v556_v5  ;;  %v629_v15 = vadd.f32 %v625_v7, %v557_v10 }
 0x1cb   : > { %v680_v11 = vadd.f32 %v657_v6, %v628_v9  ;;  %v681_v18 = vadd.f32 %v677_v12, %v629_v15 }
 0x1d8   : > { %v729_v13 = vpop.f32.mrf.mxu2 }
 0x1d9   : > { %v752_v16 = vadd.f32 %v729_v13, %v680_v11 }
 0x1e0   : > { %v749_v17 = vpop.f32.mrf.mxu3 }
 0x1e1   : > { %v753_v25 = vadd.f32 %v749_v17, %v681_v18 }
 0x1e2   : > { %v801_v14 = vpop.f32.mrf.mxu0 }
 0x1e3   : > { %v824_v19 = vadd.f32 %v801_v14, %v752_v16 }
 0x1ea   : > { %v821_v23 = vpop.f32.mrf.mxu1 }
 0x1eb   : > { %v825_v29 = vadd.f32 %v821_v23, %v753_v25 }
 0x1f8   : > { %v893_v28 = vpop.f32.mrf.mxu3 }
 0x1f9   : > { %v897_v32 = vadd.f32 %v893_v28, %v825_v29 }
 0x200   : > { %v873_v20 = vpop.f32.mrf.mxu2 }
 0x201   : > { %v896_v21 = vadd.f32 %v873_v20, %v824_v19 }
 0x202   : > { %v945_v24 = vpop.f32.mrf.mxu0 }
 0x203   : > { %v968_v26 = vadd.f32 %v945_v24, %v896_v21 }
 0x205   : > { %v976_v27 = vadd.f32 %v974_v22, %v968_v26 }
 0x207   : > { %v978_v30 = vmax.f32 %v976_v27, 0.0 }
 0x209   : > { %1006 = vmatpush.msra.mxu2 %v978_v30 }
 0x20a   : > { %v965_v33 = vpop.f32.mrf.mxu1  ;;  %1137 = vmatmul.msk.f32.vlgmr.msra.gmra.mxu2 %vm987_vm10, %v980_v31 }
 0x20b   : > { %v969_v34 = vadd.f32 %v965_v33, %v897_v32 }
 0x20d   : > { %v977_v35 = vadd.f32 %v974_v22, %v969_v34 }
 0x20f   : > { %v979_v36 = vmax.f32 %v977_v35, 0.0 }
 0x211   : > { %1026 = vmatpush.msra.mxu3 %v979_v36 }
 0x212   : > { %1138 = vmatmul.msk.f32.vlgmr.msra.gmra.mxu3 %vm987_vm10, %v980_v31 }
 0x28d   : > { %v1008_v40 = vpop.f32.mrf.mxu2 }
 0x28e   : > { %v1009_v43 = vadd.f32 %v1008_v40, %v985_v37 }
 0x295   : > { %v1028_v41 = vpop.f32.mrf.mxu3 }
 0x296   : > { %v1029_v42 = vadd.f32 %v1028_v41, %v985_v37 }
 0x298   : > { %v1033_v44 = vrot.slane %v1029_v42, 4 }
 0x29a   : > { %v1034_v45 = vsel %vm390_vm2, %v1009_v43, %v1033_v44 }
 0x29b   : > { %1036 = vst [vmem:[%s305_s19] sm:$0x77] %v1034_v45 }
 0x29c PF: > { %s18_s27 = sadd.s32 1, %s1171_s27  }
 0x29d   : > { %p15_p4 = scmp.ge.s32.totalorder %s18_s27, 4  }
 0x29f   :  { %17 = sbr.rel (!%p15_p4) target bundleno = 1 (0x1), region = 82 }

</bundles_post_ra>
